<compile_context>
chip_gen: v7x
topology: tpu7x:2x2x1
jax: 0.10.0
libtpu: 0.0.40
codegen_flags: <defaults>
</compile_context>

<pallas_src>
import jax
import jax.numpy as jnp
from jax.experimental import pallas as pl
from jax.experimental.pallas import tpu as pltpu


def _mish(x):
    """mish(x) = x * tanh(softplus(x)) as a rational in v = exp(-|x|).

    tanh(softplus(x)) = (u^2 + 2u) / (u^2 + 2u + 2) with u = e^x.
    With v = exp(-|x|) (<= 1, never overflows):
      x >= 0: num = 1 + 2v      den = num + 2v^2
      x <  0: num = v^2 + 2v    den = num + 2
    One EUP exp + one approx reciprocal; the rest is VPU work.
    """
    v = jnp.exp(-jnp.abs(x))
    pos = x >= 0.0
    two_v = 2.0 * v
    v2 = v * v
    num = jnp.where(pos, 1.0 + two_v, v2 + two_v)
    den = num + jnp.where(pos, 2.0 * v2, 2.0)
    return x * num * pl.reciprocal(den, approx=True)


def _critic_kernel(s_ref, a_ref, g_ref,
                   w1s_ref, w1a_ref, w1g_ref, b1_ref,
                   w2_ref, b2_ref,
                   w3_ref, b3_ref,
                   w4_ref, b4_ref,
                   o_ref):
    """One (head, batch-block) tile per grid step.

    Per-head refs carry a leading size-1 head dim (indexed away with [0]).
    Weights are bf16; activations and accumulation are f32.
    """
    s16 = s_ref[...].astype(jnp.bfloat16)
    a16 = a_ref[...].astype(jnp.bfloat16)
    g16 = g_ref[...].astype(jnp.bfloat16)

    # Layer 1: x @ W1 + b1 with W1 pre-split -> no concat of (s, a, g) needed.
    h = (jnp.dot(s16, w1s_ref[0], preferred_element_type=jnp.float32)
         + jnp.dot(a16, w1a_ref[0], preferred_element_type=jnp.float32)
         + jnp.dot(g16, w1g_ref[0], preferred_element_type=jnp.float32)
         + b1_ref[0])
    h = _mish(h)

    h = jnp.dot(h.astype(jnp.bfloat16), w2_ref[0],
                preferred_element_type=jnp.float32) + b2_ref[0]
    h = _mish(h)

    h = jnp.dot(h.astype(jnp.bfloat16), w3_ref[0],
                preferred_element_type=jnp.float32) + b3_ref[0]
    h = _mish(h)

    o_ref[0] = (jnp.dot(h.astype(jnp.bfloat16), w4_ref[0],
                        preferred_element_type=jnp.float32) + b4_ref[0])


def _pick_batch_block(batch):
    """Whole batch if small; otherwise the largest evenly-dividing big tile."""
    for bb in (512, 256, 128):
        if batch > bb and batch % bb == 0:
            return bb
    return batch


def critic_forward(state, action, goal, params):
    """Mirrors Critic.forward: returns (q1, q2), each (B, 1) f32."""
    w1s, w1a, w1g, b1, w2, b2, w3, b3, w4, b4 = params
    B = state.shape[0]
    H = w2.shape[-1]
    sd, ad, gd = state.shape[1], action.shape[1], goal.shape[1]
    bb = _pick_batch_block(B)
    nb = B // bb

    def batched(cols):      # shared across heads, tiled along batch
        return pl.BlockSpec((bb, cols), lambda h, b: (b, 0))

    def per_head(shape):    # stacked on a leading head axis, resident across b
        n = len(shape)
        return pl.BlockSpec((1,) + shape, lambda h, b, n=n: (h,) + (0,) * n)

    out = pl.pallas_call(
        _critic_kernel,
        out_shape=jax.ShapeDtypeStruct((2, B, 1), jnp.float32),
        grid_spec=pltpu.PrefetchScalarGridSpec(
            num_scalar_prefetch=0,
            grid=(2, nb),   # (head, batch block); head outermost for megacore
            in_specs=[
                batched(sd), batched(ad), batched(gd),
                per_head((sd, H)), per_head((ad, H)), per_head((gd, H)),
                per_head((1, H)),
                per_head((H, H)), per_head((1, H)),
                per_head((H, H)), per_head((1, H)),
                per_head((H, 1)), per_head((1, 1)),
            ],
            out_specs=pl.BlockSpec((1, bb, 1), lambda h, b: (h, b, 0)),
        ),
        # Both axes are independent: v7x megacore shards the head axis across
        # its two TensorCores; v5e/v6e get a pipelined sequential loop.
        compiler_params=pltpu.CompilerParams(
            dimension_semantics=("parallel", "parallel")),
    )(state, action, goal, w1s, w1a, w1g, b1, w2, b2, w3, b3, w4, b4)
    return out[0], out[1]


# ----------------------------- parameter setup ------------------------------

def _init_linear(key, fan_in, fan_out):
    """nn.Linear-style init U(-1/sqrt(in), 1/sqrt(in)); W stored as (in, out)."""
    kw, kb = jax.random.split(key)
    bound = 1.0 / jnp.sqrt(jnp.float32(fan_in))
    w = jax.random.uniform(kw, (fan_in, fan_out), jnp.float32, -bound, bound)
    b = jax.random.uniform(kb, (1, fan_out), jnp.float32, -bound, bound)
    return w, b


def init_qnet_params(key, in_dim, hidden_dim):
    k1, k2, k3, k4 = jax.random.split(key, 4)
    w1, b1 = _init_linear(k1, in_dim, hidden_dim)
    w2, b2 = _init_linear(k2, hidden_dim, hidden_dim)
    w3, b3 = _init_linear(k3, hidden_dim, hidden_dim)
    w4, b4 = _init_linear(k4, hidden_dim, 1)
    return (w1, b1, w2, b2, w3, b3, w4, b4)


def pack_critic_params(qf1, qf2, state_dim, action_dim, goal_dim):
    """Stack qf1/qf2 on a leading head axis; weights -> bf16, biases stay f32.

    W1 is split into state/action/goal chunks so the kernel never needs the
    concatenated x.
    """
    def stack(i):
        return jnp.stack([qf1[i], qf2[i]], axis=0)

    w1 = stack(0)                                           # (2, D, H) f32
    w1s = w1[:, :state_dim].astype(jnp.bfloat16)            # (2, S, H)
    w1a = w1[:, state_dim:state_dim + action_dim].astype(jnp.bfloat16)
    w1g = w1[:, state_dim + action_dim:].astype(jnp.bfloat16)
    b1 = stack(1)                                           # (2, 1, H) f32
    w2 = stack(2).astype(jnp.bfloat16)                      # (2, H, H)
    b2 = stack(3)
    w3 = stack(4).astype(jnp.bfloat16)                      # (2, H, H)
    b3 = stack(5)
    w4 = stack(6).astype(jnp.bfloat16)                      # (2, H, 1)
    b4 = stack(7)                                           # (2, 1, 1)
    return (w1s, w1a, w1g, b1, w2, b2, w3, b3, w4, b4)


# --------------------------------- demo --------------------------------------

if __name__ == "__main__":
    batch = 8
    state_dim, action_dim, goal_dim = 11, 3, 2
    hidden_dim = 256  # module default

    key = jax.random.PRNGKey(0)
    k_state, k_action, k_goal, k_qf1, k_qf2 = jax.random.split(key, 5)

    state = jax.random.normal(k_state, (batch, state_dim), jnp.float32)
    action = jax.random.normal(k_action, (batch, action_dim), jnp.float32)
    goal = jax.random.normal(k_goal, (batch, goal_dim), jnp.float32)

    in_dim = state_dim + action_dim + goal_dim
    qf1_raw = init_qnet_params(k_qf1, in_dim, hidden_dim)
    qf2_raw = init_qnet_params(k_qf2, in_dim, hidden_dim)
    packed = pack_critic_params(qf1_raw, qf2_raw, state_dim, action_dim, goal_dim)

    fwd = jax.jit(critic_forward)
    q1, q2 = fwd(state, action, goal, packed)
    jax.block_until_ready((q1, q2))

    # Pure-JAX reference with the same bf16-rounded weights / bf16 matmul
    # inputs and f32 accumulation (exact Mish), so the comparison isolates the
    # kernel rather than the intentional bf16 precision change.
    def ref_forward(state, action, goal, params):
        w1s, w1a, w1g, b1, w2, b2, w3, b3, w4, b4 = params
        f32 = lambda t: t.astype(jnp.float32)
        bf = lambda t: t.astype(jnp.bfloat16).astype(jnp.float32)

        def mish(x):
            return x * jnp.tanh(jnp.logaddexp(x, 0.0))

        qs = []
        for h in (0, 1):
            z = (bf(state) @ f32(w1s[h]) + bf(action) @ f32(w1a[h])
                 + bf(goal) @ f32(w1g[h]) + b1[h])
            z = mish(z)
            z = mish(bf(z) @ f32(w2[h]) + b2[h])
            z = mish(bf(z) @ f32(w3[h]) + b3[h])
            qs.append(bf(z) @ f32(w4[h]) + b4[h])
        return qs[0], qs[1]

    r1, r2 = ref_forward(state, action, goal, packed)
    assert q1.shape == (batch, 1) and q2.shape == (batch, 1)
    assert jnp.allclose(q1, r1, atol=1e-2, rtol=1e-2), \
        f"q1 mismatch, max abs err {jnp.max(jnp.abs(q1 - r1))}"
    assert jnp.allclose(q2, r2, atol=1e-2, rtol=1e-2), \
        f"q2 mismatch, max abs err {jnp.max(jnp.abs(q2 - r2))}"

    print("KERNEL_OK")
</pallas_src>

<mosaic_0001>
module attributes {stable_mosaic.version = 11 : i64} {
  func.func @_critic_kernel(%arg0: i32, %arg1: i32, %arg2: memref<8x11xf32, #tpu.memory_space<vmem>>, %arg3: memref<8x3xf32, #tpu.memory_space<vmem>>, %arg4: memref<8x2xf32, #tpu.memory_space<vmem>>, %arg5: memref<1x11x256xbf16, #tpu.memory_space<vmem>>, %arg6: memref<1x3x256xbf16, #tpu.memory_space<vmem>>, %arg7: memref<1x2x256xbf16, #tpu.memory_space<vmem>>, %arg8: memref<1x1x256xf32, #tpu.memory_space<vmem>>, %arg9: memref<1x256x256xbf16, #tpu.memory_space<vmem>>, %arg10: memref<1x1x256xf32, #tpu.memory_space<vmem>>, %arg11: memref<1x256x256xbf16, #tpu.memory_space<vmem>>, %arg12: memref<1x1x256xf32, #tpu.memory_space<vmem>>, %arg13: memref<1x256x1xbf16, #tpu.memory_space<vmem>>, %arg14: memref<1x1x1xf32, #tpu.memory_space<vmem>>, %arg15: memref<1x8x1xf32, #tpu.memory_space<vmem>>) attributes {dimension_semantics = [#tpu.dimension_semantics<parallel>, #tpu.dimension_semantics<parallel>], iteration_bounds = array<i64: 2, 1>, scalar_prefetch = 0 : i64, scratch_operands = 0 : i64, tpu.core_type = #tpu.core_type<tc>, window_params = [{transform_indices = @transform_0, window_bounds = array<i64: 8, 11>}, {transform_indices = @transform_1, window_bounds = array<i64: 8, 3>}, {transform_indices = @transform_2, window_bounds = array<i64: 8, 2>}, {transform_indices = @transform_3, window_bounds = array<i64: 1, 11, 256>}, {transform_indices = @transform_4, window_bounds = array<i64: 1, 3, 256>}, {transform_indices = @transform_5, window_bounds = array<i64: 1, 2, 256>}, {transform_indices = @transform_6, window_bounds = array<i64: 1, 1, 256>}, {transform_indices = @transform_7, window_bounds = array<i64: 1, 256, 256>}, {transform_indices = @transform_8, window_bounds = array<i64: 1, 1, 256>}, {transform_indices = @transform_9, window_bounds = array<i64: 1, 256, 256>}, {transform_indices = @transform_10, window_bounds = array<i64: 1, 1, 256>}, {transform_indices = @transform_11, window_bounds = array<i64: 1, 256, 1>}, {transform_indices = @transform_12, window_bounds = array<i64: 1, 1, 1>}, {transform_indices = @transform_13, window_bounds = array<i64: 1, 8, 1>}]} {
    %c0 = arith.constant 0 : index
    %c0_0 = arith.constant 0 : index
    %0 = vector.load %arg2[%c0, %c0_0] : memref<8x11xf32, #tpu.memory_space<vmem>>, vector<8x11xf32>
    %1 = arith.truncf %0 : vector<8x11xf32> to vector<8x11xbf16>
    %c0_1 = arith.constant 0 : index
    %c0_2 = arith.constant 0 : index
    %2 = vector.load %arg3[%c0_1, %c0_2] : memref<8x3xf32, #tpu.memory_space<vmem>>, vector<8x3xf32>
    %3 = arith.truncf %2 : vector<8x3xf32> to vector<8x3xbf16>
    %c0_3 = arith.constant 0 : index
    %c0_4 = arith.constant 0 : index
    %4 = vector.load %arg4[%c0_3, %c0_4] : memref<8x2xf32, #tpu.memory_space<vmem>>, vector<8x2xf32>
    %5 = arith.truncf %4 : vector<8x2xf32> to vector<8x2xbf16>
    %c0_5 = arith.constant 0 : index
    %c0_6 = arith.constant 0 : index
    %c0_7 = arith.constant 0 : index
    %6 = vector.load %arg5[%c0_5, %c0_6, %c0_7] : memref<1x11x256xbf16, #tpu.memory_space<vmem>>, vector<1x11x256xbf16>
    %7 = vector.shape_cast %6 : vector<1x11x256xbf16> to vector<11x256xbf16>
    %cst = arith.constant dense<0.000000e+00> : vector<8x256xf32>
    %8 = tpu.matmul %1, %7, %cst {dimension_numbers = #tpu.dot_dimension_numbers<[1], [0], [0], [1], [0, 0, 1, 1], [], []>} : vector<8x11xbf16>, vector<11x256xbf16>, vector<8x256xf32> -> vector<8x256xf32>
    %c0_8 = arith.constant 0 : index
    %c0_9 = arith.constant 0 : index
    %c0_10 = arith.constant 0 : index
    %9 = vector.load %arg6[%c0_8, %c0_9, %c0_10] : memref<1x3x256xbf16, #tpu.memory_space<vmem>>, vector<1x3x256xbf16>
    %10 = vector.shape_cast %9 : vector<1x3x256xbf16> to vector<3x256xbf16>
    %cst_11 = arith.constant dense<0.000000e+00> : vector<8x256xf32>
    %11 = tpu.matmul %3, %10, %cst_11 {dimension_numbers = #tpu.dot_dimension_numbers<[1], [0], [0], [1], [0, 0, 1, 1], [], []>} : vector<8x3xbf16>, vector<3x256xbf16>, vector<8x256xf32> -> vector<8x256xf32>
    %12 = arith.addf %8, %11 : vector<8x256xf32>
    %c0_12 = arith.constant 0 : index
    %c0_13 = arith.constant 0 : index
    %c0_14 = arith.constant 0 : index
    %13 = vector.load %arg7[%c0_12, %c0_13, %c0_14] : memref<1x2x256xbf16, #tpu.memory_space<vmem>>, vector<1x2x256xbf16>
    %14 = vector.shape_cast %13 : vector<1x2x256xbf16> to vector<2x256xbf16>
    %cst_15 = arith.constant dense<0.000000e+00> : vector<8x256xf32>
    %15 = tpu.matmul %5, %14, %cst_15 {dimension_numbers = #tpu.dot_dimension_numbers<[1], [0], [0], [1], [0, 0, 1, 1], [], []>} : vector<8x2xbf16>, vector<2x256xbf16>, vector<8x256xf32> -> vector<8x256xf32>
    %16 = arith.addf %12, %15 : vector<8x256xf32>
    %c0_16 = arith.constant 0 : index
    %c0_17 = arith.constant 0 : index
    %c0_18 = arith.constant 0 : index
    %17 = vector.load %arg8[%c0_16, %c0_17, %c0_18] : memref<1x1x256xf32, #tpu.memory_space<vmem>>, vector<1x1x256xf32>
    %18 = vector.shape_cast %17 : vector<1x1x256xf32> to vector<1x256xf32>
    %19 = vector.broadcast %18 : vector<1x256xf32> to vector<8x256xf32>
    %20 = arith.addf %16, %19 : vector<8x256xf32>
    %21 = math.absf %20 : vector<8x256xf32>
    %cst_19 = arith.constant 0.000000e+00 : f32
    %22 = vector.broadcast %cst_19 : f32 to vector<8x256xf32>
    %23 = arith.subf %22, %21 : vector<8x256xf32>
    %24 = math.exp %23 : vector<8x256xf32>
    %cst_20 = arith.constant 0.000000e+00 : f32
    %25 = vector.broadcast %cst_20 : f32 to vector<8x256xf32>
    %26 = arith.cmpf oge, %20, %25 : vector<8x256xf32>
    %cst_21 = arith.constant 2.000000e+00 : f32
    %27 = vector.broadcast %cst_21 : f32 to vector<8x256xf32>
    %28 = arith.mulf %27, %24 : vector<8x256xf32>
    %29 = arith.mulf %24, %24 : vector<8x256xf32>
    %cst_22 = arith.constant 1.000000e+00 : f32
    %30 = vector.broadcast %cst_22 : f32 to vector<8x256xf32>
    %31 = arith.addf %30, %28 : vector<8x256xf32>
    %32 = arith.addf %29, %28 : vector<8x256xf32>
    %33 = arith.select %26, %31, %32 : vector<8x256xi1>, vector<8x256xf32>
    %cst_23 = arith.constant 2.000000e+00 : f32
    %34 = vector.broadcast %cst_23 : f32 to vector<8x256xf32>
    %35 = arith.mulf %34, %29 : vector<8x256xf32>
    %cst_24 = arith.constant 2.000000e+00 : f32
    %36 = vector.broadcast %cst_24 : f32 to vector<8x256xf32>
    %37 = arith.select %26, %35, %36 : vector<8x256xi1>, vector<8x256xf32>
    %38 = arith.addf %33, %37 : vector<8x256xf32>
    %39 = arith.mulf %20, %33 : vector<8x256xf32>
    %40 = tpu.reciprocal %38 {approx = true} : vector<8x256xf32> -> vector<8x256xf32>
    %41 = arith.mulf %39, %40 : vector<8x256xf32>
    %42 = arith.truncf %41 : vector<8x256xf32> to vector<8x256xbf16>
    %c0_25 = arith.constant 0 : index
    %c0_26 = arith.constant 0 : index
    %c0_27 = arith.constant 0 : index
    %43 = vector.load %arg9[%c0_25, %c0_26, %c0_27] : memref<1x256x256xbf16, #tpu.memory_space<vmem>>, vector<1x256x256xbf16>
    %44 = vector.shape_cast %43 : vector<1x256x256xbf16> to vector<256x256xbf16>
    %cst_28 = arith.constant dense<0.000000e+00> : vector<8x256xf32>
    %45 = tpu.matmul %42, %44, %cst_28 {dimension_numbers = #tpu.dot_dimension_numbers<[1], [0], [0], [1], [0, 0, 1, 1], [], []>} : vector<8x256xbf16>, vector<256x256xbf16>, vector<8x256xf32> -> vector<8x256xf32>
    %c0_29 = arith.constant 0 : index
    %c0_30 = arith.constant 0 : index
    %c0_31 = arith.constant 0 : index
    %46 = vector.load %arg10[%c0_29, %c0_30, %c0_31] : memref<1x1x256xf32, #tpu.memory_space<vmem>>, vector<1x1x256xf32>
    %47 = vector.shape_cast %46 : vector<1x1x256xf32> to vector<1x256xf32>
    %48 = vector.broadcast %47 : vector<1x256xf32> to vector<8x256xf32>
    %49 = arith.addf %45, %48 : vector<8x256xf32>
    %50 = math.absf %49 : vector<8x256xf32>
    %cst_32 = arith.constant 0.000000e+00 : f32
    %51 = vector.broadcast %cst_32 : f32 to vector<8x256xf32>
    %52 = arith.subf %51, %50 : vector<8x256xf32>
    %53 = math.exp %52 : vector<8x256xf32>
    %cst_33 = arith.constant 0.000000e+00 : f32
    %54 = vector.broadcast %cst_33 : f32 to vector<8x256xf32>
    %55 = arith.cmpf oge, %49, %54 : vector<8x256xf32>
    %cst_34 = arith.constant 2.000000e+00 : f32
    %56 = vector.broadcast %cst_34 : f32 to vector<8x256xf32>
    %57 = arith.mulf %56, %53 : vector<8x256xf32>
    %58 = arith.mulf %53, %53 : vector<8x256xf32>
    %cst_35 = arith.constant 1.000000e+00 : f32
    %59 = vector.broadcast %cst_35 : f32 to vector<8x256xf32>
    %60 = arith.addf %59, %57 : vector<8x256xf32>
    %61 = arith.addf %58, %57 : vector<8x256xf32>
    %62 = arith.select %55, %60, %61 : vector<8x256xi1>, vector<8x256xf32>
    %cst_36 = arith.constant 2.000000e+00 : f32
    %63 = vector.broadcast %cst_36 : f32 to vector<8x256xf32>
    %64 = arith.mulf %63, %58 : vector<8x256xf32>
    %cst_37 = arith.constant 2.000000e+00 : f32
    %65 = vector.broadcast %cst_37 : f32 to vector<8x256xf32>
    %66 = arith.select %55, %64, %65 : vector<8x256xi1>, vector<8x256xf32>
    %67 = arith.addf %62, %66 : vector<8x256xf32>
    %68 = arith.mulf %49, %62 : vector<8x256xf32>
    %69 = tpu.reciprocal %67 {approx = true} : vector<8x256xf32> -> vector<8x256xf32>
    %70 = arith.mulf %68, %69 : vector<8x256xf32>
    %71 = arith.truncf %70 : vector<8x256xf32> to vector<8x256xbf16>
    %c0_38 = arith.constant 0 : index
    %c0_39 = arith.constant 0 : index
    %c0_40 = arith.constant 0 : index
    %72 = vector.load %arg11[%c0_38, %c0_39, %c0_40] : memref<1x256x256xbf16, #tpu.memory_space<vmem>>, vector<1x256x256xbf16>
    %73 = vector.shape_cast %72 : vector<1x256x256xbf16> to vector<256x256xbf16>
    %cst_41 = arith.constant dense<0.000000e+00> : vector<8x256xf32>
    %74 = tpu.matmul %71, %73, %cst_41 {dimension_numbers = #tpu.dot_dimension_numbers<[1], [0], [0], [1], [0, 0, 1, 1], [], []>} : vector<8x256xbf16>, vector<256x256xbf16>, vector<8x256xf32> -> vector<8x256xf32>
    %c0_42 = arith.constant 0 : index
    %c0_43 = arith.constant 0 : index
    %c0_44 = arith.constant 0 : index
    %75 = vector.load %arg12[%c0_42, %c0_43, %c0_44] : memref<1x1x256xf32, #tpu.memory_space<vmem>>, vector<1x1x256xf32>
    %76 = vector.shape_cast %75 : vector<1x1x256xf32> to vector<1x256xf32>
    %77 = vector.broadcast %76 : vector<1x256xf32> to vector<8x256xf32>
    %78 = arith.addf %74, %77 : vector<8x256xf32>
    %79 = math.absf %78 : vector<8x256xf32>
    %cst_45 = arith.constant 0.000000e+00 : f32
    %80 = vector.broadcast %cst_45 : f32 to vector<8x256xf32>
    %81 = arith.subf %80, %79 : vector<8x256xf32>
    %82 = math.exp %81 : vector<8x256xf32>
    %cst_46 = arith.constant 0.000000e+00 : f32
    %83 = vector.broadcast %cst_46 : f32 to vector<8x256xf32>
    %84 = arith.cmpf oge, %78, %83 : vector<8x256xf32>
    %cst_47 = arith.constant 2.000000e+00 : f32
    %85 = vector.broadcast %cst_47 : f32 to vector<8x256xf32>
    %86 = arith.mulf %85, %82 : vector<8x256xf32>
    %87 = arith.mulf %82, %82 : vector<8x256xf32>
    %cst_48 = arith.constant 1.000000e+00 : f32
    %88 = vector.broadcast %cst_48 : f32 to vector<8x256xf32>
    %89 = arith.addf %88, %86 : vector<8x256xf32>
    %90 = arith.addf %87, %86 : vector<8x256xf32>
    %91 = arith.select %84, %89, %90 : vector<8x256xi1>, vector<8x256xf32>
    %cst_49 = arith.constant 2.000000e+00 : f32
    %92 = vector.broadcast %cst_49 : f32 to vector<8x256xf32>
    %93 = arith.mulf %92, %87 : vector<8x256xf32>
    %cst_50 = arith.constant 2.000000e+00 : f32
    %94 = vector.broadcast %cst_50 : f32 to vector<8x256xf32>
    %95 = arith.select %84, %93, %94 : vector<8x256xi1>, vector<8x256xf32>
    %96 = arith.addf %91, %95 : vector<8x256xf32>
    %97 = arith.mulf %78, %91 : vector<8x256xf32>
    %98 = tpu.reciprocal %96 {approx = true} : vector<8x256xf32> -> vector<8x256xf32>
    %99 = arith.mulf %97, %98 : vector<8x256xf32>
    %100 = arith.truncf %99 : vector<8x256xf32> to vector<8x256xbf16>
    %c0_51 = arith.constant 0 : index
    %c0_52 = arith.constant 0 : index
    %c0_53 = arith.constant 0 : index
    %101 = vector.load %arg13[%c0_51, %c0_52, %c0_53] : memref<1x256x1xbf16, #tpu.memory_space<vmem>>, vector<1x256x1xbf16>
    %102 = vector.shape_cast %101 : vector<1x256x1xbf16> to vector<256x1xbf16>
    %cst_54 = arith.constant dense<0.000000e+00> : vector<8x1xf32>
    %103 = tpu.matmul %100, %102, %cst_54 {dimension_numbers = #tpu.dot_dimension_numbers<[1], [0], [0], [1], [0, 0, 1, 1], [], []>} : vector<8x256xbf16>, vector<256x1xbf16>, vector<8x1xf32> -> vector<8x1xf32>
    %c0_55 = arith.constant 0 : index
    %c0_56 = arith.constant 0 : index
    %c0_57 = arith.constant 0 : index
    %104 = vector.load %arg14[%c0_55, %c0_56, %c0_57] : memref<1x1x1xf32, #tpu.memory_space<vmem>>, vector<1x1x1xf32>
    %105 = vector.shape_cast %104 : vector<1x1x1xf32> to vector<1x1xf32>
    %106 = vector.broadcast %105 : vector<1x1xf32> to vector<8x1xf32>
    %107 = arith.addf %103, %106 : vector<8x1xf32>
    %c0_58 = arith.constant 0 : index
    %c0_59 = arith.constant 0 : index
    %c0_60 = arith.constant 0 : index
    %108 = vector.load %arg15[%c0_58, %c0_59, %c0_60] : memref<1x8x1xf32, #tpu.memory_space<vmem>>, vector<1x8x1xf32>
    %109 = vector.shape_cast %108 : vector<1x8x1xf32> to vector<8x1xf32>
    %110 = vector.shape_cast %107 : vector<8x1xf32> to vector<1x8x1xf32>
    tpu.vector_store %arg15[%c0_58, %c0_59, %c0_60], %110 {strides = array<i32>} : memref<1x8x1xf32, #tpu.memory_space<vmem>>, vector<1x8x1xf32>,
    return
  }
  func.func @transform_0(%arg0: i32, %arg1: i32) -> (i32, i32) {
    %c0_i32 = arith.constant 0 : i32
    %c0_i32_0 = arith.constant 0 : i32
    return %arg1, %c0_i32 : i32, i32
  }
  func.func @transform_1(%arg0: i32, %arg1: i32) -> (i32, i32) {
    %c0_i32 = arith.constant 0 : i32
    %c0_i32_0 = arith.constant 0 : i32
    return %arg1, %c0_i32 : i32, i32
  }
  func.func @transform_2(%arg0: i32, %arg1: i32) -> (i32, i32) {
    %c0_i32 = arith.constant 0 : i32
    %c0_i32_0 = arith.constant 0 : i32
    return %arg1, %c0_i32 : i32, i32
  }
  func.func @transform_3(%arg0: i32, %arg1: i32) -> (i32, i32, i32) {
    %c0_i32 = arith.constant 0 : i32
    %c0_i32_0 = arith.constant 0 : i32
    %c0_i32_1 = arith.constant 0 : i32
    return %arg0, %c0_i32, %c0_i32_0 : i32, i32, i32
  }
  func.func @transform_4(%arg0: i32, %arg1: i32) -> (i32, i32, i32) {
    %c0_i32 = arith.constant 0 : i32
    %c0_i32_0 = arith.constant 0 : i32
    %c0_i32_1 = arith.constant 0 : i32
    return %arg0, %c0_i32, %c0_i32_0 : i32, i32, i32
  }
  func.func @transform_5(%arg0: i32, %arg1: i32) -> (i32, i32, i32) {
    %c0_i32 = arith.constant 0 : i32
    %c0_i32_0 = arith.constant 0 : i32
    %c0_i32_1 = arith.constant 0 : i32
    return %arg0, %c0_i32, %c0_i32_0 : i32, i32, i32
  }
  func.func @transform_6(%arg0: i32, %arg1: i32) -> (i32, i32, i32) {
    %c0_i32 = arith.constant 0 : i32
    %c0_i32_0 = arith.constant 0 : i32
    %c0_i32_1 = arith.constant 0 : i32
    return %arg0, %c0_i32, %c0_i32_0 : i32, i32, i32
  }
  func.func @transform_7(%arg0: i32, %arg1: i32) -> (i32, i32, i32) {
    %c0_i32 = arith.constant 0 : i32
    %c0_i32_0 = arith.constant 0 : i32
    %c0_i32_1 = arith.constant 0 : i32
    return %arg0, %c0_i32, %c0_i32_0 : i32, i32, i32
  }
  func.func @transform_8(%arg0: i32, %arg1: i32) -> (i32, i32, i32) {
    %c0_i32 = arith.constant 0 : i32
    %c0_i32_0 = arith.constant 0 : i32
    %c0_i32_1 = arith.constant 0 : i32
    return %arg0, %c0_i32, %c0_i32_0 : i32, i32, i32
  }
  func.func @transform_9(%arg0: i32, %arg1: i32) -> (i32, i32, i32) {
    %c0_i32 = arith.constant 0 : i32
    %c0_i32_0 = arith.constant 0 : i32
    %c0_i32_1 = arith.constant 0 : i32
    return %arg0, %c0_i32, %c0_i32_0 : i32, i32, i32
  }
  func.func @transform_10(%arg0: i32, %arg1: i32) -> (i32, i32, i32) {
    %c0_i32 = arith.constant 0 : i32
    %c0_i32_0 = arith.constant 0 : i32
    %c0_i32_1 = arith.constant 0 : i32
    return %arg0, %c0_i32, %c0_i32_0 : i32, i32, i32
  }
  func.func @transform_11(%arg0: i32, %arg1: i32) -> (i32, i32, i32) {
    %c0_i32 = arith.constant 0 : i32
    %c0_i32_0 = arith.constant 0 : i32
    %c0_i32_1 = arith.constant 0 : i32
    return %arg0, %c0_i32, %c0_i32_0 : i32, i32, i32
  }
  func.func @transform_12(%arg0: i32, %arg1: i32) -> (i32, i32, i32) {
    %c0_i32 = arith.constant 0 : i32
    %c0_i32_0 = arith.constant 0 : i32
    %c0_i32_1 = arith.constant 0 : i32
    return %arg0, %c0_i32, %c0_i32_0 : i32, i32, i32
  }
  func.func @transform_13(%arg0: i32, %arg1: i32) -> (i32, i32, i32) {
    %c0_i32 = arith.constant 0 : i32
    %c0_i32_0 = arith.constant 0 : i32
    return %arg0, %arg1, %c0_i32 : i32, i32, i32
  }
}

</mosaic_0001>

<bundles_post_ra>
// kernel: critic_forward.1
= control target key start
LH: loop header
LB: loop body
LE: loop exit
PB: predicated region body
PF: predicated region fallthrough
CT: control target
= control target key end

     0   :  { %s2830_s0 = inlined_call_operand.vmem [shape: f32[8,11], index: 0, kind: input, shape index: {}]   ;;  %s2831_s1 = inlined_call_operand.vmem [shape: f32[8,3], index: 1, kind: input, shape index: {}]   ;;  %s2832_s2 = inlined_call_operand.vmem [shape: f32[8,2], index: 2, kind: input, shape index: {}]   ;;  %s2833_s3 = inlined_call_operand.vmem [shape: bf16[2,11,256], index: 3, kind: input, shape index: {}]   ;;  %s2834_s4 = inlined_call_operand.vmem [shape: bf16[2,3,256], index: 4, kind: input, shape index: {}]   ;;  %s2835_s5 = inlined_call_operand.vmem [shape: bf16[2,2,256], index: 5, kind: input, shape index: {}]   ;;  %s2836_s6 = inlined_call_operand.vmem [shape: f32[2,1,256], index: 6, kind: input, shape index: {}]   ;;  %s2837_s7 = inlined_call_operand.hbm [shape: bf16[2,256,256], index: 7, kind: input, shape index: {}]   ;;  %s2838_s8 = inlined_call_operand.vmem [shape: f32[2,1,256], index: 8, kind: input, shape index: {}]   ;;  %s2839_s9 = inlined_call_operand.hbm [shape: bf16[2,256,256], index: 9, kind: input, shape index: {}]   ;;  %s2840_s10 = inlined_call_operand.vmem [shape: f32[2,1,256], index: 10, kind: input, shape index: {}]   ;;  %s2841_s11 = inlined_call_operand.vmem [shape: bf16[2,256,1], index: 11, kind: input, shape index: {}]   ;;  %s2842_s12 = inlined_call_operand.vmem [shape: f32[2,1,1], index: 12, kind: input, shape index: {}]   ;;  %s2843_s13 = inlined_call_operand.vmem [shape: f32[2,8,1], index: 13, kind: output, shape index: {}]  }
   0x1   :  { %2850 = sst [smem:[#allocation11_spill]] %s2837_s7 }
   0x2   :  { %2851 = sst [smem:[#allocation12_spill]] %s2842_s12 }
   0x3   :  { %2852 = sst [smem:[#allocation13_spill]] %s2843_s13 }
   0x4   :  { %18 = vsyncpa [#allocation3], 0 }
   0x5   :  { %20 = vsyncpa [#allocation3 + $0x1], 0 }
   0x6   :  { %21 = vsyncpa [#allocation5], 0 }
   0x7   :  { %23 = vsyncpa [#allocation5 + $0x1], 0  ;;  %s2495_s25 = smov 0   ;;  %s2497_s26 = smov 0  }
   0x8   :  { %s2499_s27 = smov 0   ;;  %s2501_s28 = smov 0  }
   0x9   :  { %s2503_s29 = smov 0   ;;  %s2505_s30 = smov 0  }
   0xa LB: > { %2853 = sst [smem:[#allocation8_spill]] %s2404_s27  ;;  %s1953_s14 = sadd.s32 4294967295, %s2416_s30   ;;  %s2416_s30 = sphi %s2505_s30, %s29_s30   ;;  %s2412_s29 = sphi %s2503_s29, %s2874_s29   ;;  %s2408_s28 = sphi %s2501_s28, %s2873_s28   ;;  %s2404_s27 = sphi %s2499_s27, %s2869_s27   ;;  %s2400_s26 = sphi %s2497_s26, %s2872_s26   ;;  %s2396_s25 = sphi %s2495_s25, %s2871_s25  }
   0xb   : > { %s41_s15 = sadd.s32 1, %s2412_s29  ;;  %s230_s16 = sadd.s32 1, %s2404_s27 }
   0xc   : > { %p43_p0 = scmp.ge.s32.totalorder %s41_s15, 2  ;;  %p237_p1 = scmp.ne.s32.totalorder %s2404_s27, %s2400_s26 }
   0xd   : > { %p238_p2 = scmp.eq.s32.totalorder %s2416_s30, 0  ;;  %p243_p4 = scmp.ne.s32.totalorder %s2400_s26, %s2396_s25 }
   0xe   : > { %s2876_s15 = smov (%p43_p0, %s41_s15), 0  ;;  %p244_p5 = scmp.eq.s32.totalorder %s1953_s14, 0 }
   0xf   : > { %2854 = sst [smem:[#allocation9_spill]] %s2876_s15  ;;  %p2531_p3 = por %p238_p2, %p237_p1 }
  0x10   : > { %s227_s18 = ssub.s32 %s2412_s29, %s2876_s15  ;;  %p2538_p7 = por %p244_p5, %p243_p4 }
  0x11   : > { %p228_p6 = scmp.eq.s32.totalorder %s227_s18, 0  ;;  %p2109_p8 = scmp.lt.s32.totalorder %s2416_s30, 2 }
  0x12   : > { %s2856_s19 = scalar_select %p2538_p7, 1, 0 }
  0x13   : > { %s2544_s20 = scalar_select %p228_p6, %s2404_s27, %s230_s16  }
  0x14   : > { %s2547_s21 = sand.u32 1, %s2404_s27   ;;  %s2846_s22 = sshll.u32 %s2412_s29, 12 }
  0x15   : > { %2857 = sst [smem:[#allocation10_spill]] %s2544_s20  ;;  %s2845_s23 = sshll.u32 %s2547_s21, 8 }
  0x16   : > { %s2858_s7 = sld [smem:[#allocation11_spill]]  ;;  %s480_s16 = scalar_lea.vmem [#allocation2], %s2845_s23 }
  0x17   : > { %s487_s18 = sshll.u32 %s480_s16, 4  ;;  %p2562_p9 = pnand %p2109_p8, %p2531_p3  ;;  %s2566_s18 = int_to_ptr.vmem [resolvable:$true] %s487_s18 }
  0x19   : > { %p2304_p11 = pneg %p2562_p9 }
  0x1c   : > { %s2556_s14 = scalar_lea.hbm %s2858_s7, %s2846_s22  ;;  %s2307_s17 = scalar_lea.hbm %s2858_s7, 8192 }
  0x1d   : > { %s2302_s24 = scalar_lea.hbm %s2556_s14, 4096  ;;  %p2308_p0 = scmp.lt.u32.totalorder %s2556_s14, %s2858_s7 }
  0x1e   : > { %p2303_p10 = scmp.ne.s32.totalorder %s2556_s14, %s2302_s24  ;;  %p2309_p1 = scmp.lt.u32.totalorder %s2307_s17, %s2302_s24 }
  0x1f   : > { %p2311_p3 = scmp.lt.u32.totalorder %s2302_s24, %s2556_s14 }
  0x20   : > { %p2305_p12 = pnand %p2304_p11, %p2303_p10  ;;  %p2310_p2 = por %p2309_p1, %p2308_p0 }
  0x22   : > { %p2306_p13 = pneg %p2305_p12  ;;  %p2312_p4 = por %p2311_p3, %p2310_p2 }
  0x24   : > { %p2313_p5 = pnand %p2312_p4, %p2306_p13 }
  0x26   : > { %2316 = shalt.err (!%p2313_p5)
}
  0x27   : > { %s2317_s20 = scalar_lea.vmem %s2566_s18, 4096  ;;  %s2418_s25 = smov [#allocation2]  }
  0x28   : > { %p2318_p6 = scmp.ne.s32.totalorder %s2566_s18, %s2317_s20  ;;  %s2322_s16 = sshll.u32 %s2418_s25, 4  ;;  %s2323_s16 = int_to_ptr.vmem [resolvable:$false] %s2322_s16 }
  0x29   : > { %s2324_s22 = scalar_lea.vmem %s2323_s16, 8192  ;;  %p2325_p12 = scmp.lt.s32.totalorder %s2566_s18, %s2323_s16 }
  0x2a   : > { %p2320_p8 = pnand %p2318_p6, %p2304_p11  ;;  %p2326_p0 = scmp.lt.s32.totalorder %s2324_s22, %s2317_s20 }
  0x2c   : > { %p2321_p10 = pneg %p2320_p8  ;;  %p2327_p1 = por %p2326_p0, %p2325_p12 }
  0x2e   : > { %p2328_p2 = pnand %p2327_p1, %p2321_p10 }
  0x30   : > { %2331 = shalt.err (!%p2328_p2)
}
  0x31   : > { %s2848_s23 = smov 128   ;;  %s2420_s24 = smov 8  }
  0x32   : > { %s2860_s20 = scalar_lea.sflag [#allocation3], %s2547_s21  ;;  %p1966_p13 = scmp.ge.s32.totalorder %s2416_s30, 1 }
  0x33   : > { %2105 = dma.hbm_to_vmem [thread:$0]  (!%p2562_p9), %s2556_s14, 4096, %s2566_s18, %s2860_s20, %s2848_s23, %s2848_s23, %s2420_s24  }
  0x34   : > { %p544_p3 = scmp.lt.s32.totalorder %s2416_s30, 3  ;;  %s2862_s25 = sshll.u32 %s2412_s29, 12 }
  0x35   : > { %s2610_s7 = scalar_lea.hbm %s2839_s9, %s2862_s25  ;;  %s2863_s27 = sshll.u32 %s2547_s21, 8 }
  0x36   : > { %p2601_p4 = pnand %p1966_p13, %p544_p3  ;;  %s508_s13 = scalar_lea.vmem [#allocation4], %s2863_s27 }
  0x37   : > { %s515_s12 = sshll.u32 %s508_s13, 4  ;;  %s505_s14 = scalar_lea.sflag [#allocation5], %s2547_s21  ;;  %s2614_s12 = int_to_ptr.vmem [resolvable:$true] %s515_s12 }
  0x38   : > { %s2332_s18 = scalar_lea.hbm %s2610_s7, 4096  ;;  %s2337_s25 = scalar_lea.hbm %s2839_s9, 8192 }
  0x39   : > { %p2333_p5 = scmp.ne.s32.totalorder %s2610_s7, %s2332_s18  ;;  %p2338_p10 = scmp.lt.u32.totalorder %s2610_s7, %s2839_s9 }
  0x3a   : > { %p2339_p12 = scmp.lt.u32.totalorder %s2337_s25, %s2332_s18  ;;  %p2341_p1 = scmp.lt.u32.totalorder %s2332_s18, %s2610_s7 }
  0x3b   : > { %p2335_p6 = pnand %p2333_p5, %p2304_p11 }
  0x3c   : > { %p2340_p0 = por %p2339_p12, %p2338_p10 }
  0x3d   : > { %p2336_p8 = pneg %p2335_p6 }
  0x3e   : > { %p2342_p2 = por %p2341_p1, %p2340_p0 }
  0x40   : > { %p2343_p13 = pnand %p2342_p2, %p2336_p8 }
  0x42   : > { %2346 = shalt.err (!%p2343_p13)
}
  0x43   : > { %s2347_s13 = scalar_lea.vmem %s2614_s12, 4096  ;;  %s2421_s27 = smov [#allocation4]  }
  0x44   : > { %p2348_p3 = scmp.ne.s32.totalorder %s2614_s12, %s2347_s13  ;;  %s2352_s20 = sshll.u32 %s2421_s27, 4  ;;  %s2353_s20 = int_to_ptr.vmem [resolvable:$false] %s2352_s20 }
  0x45   : > { %s2354_s23 = scalar_lea.vmem %s2353_s20, 8192  ;;  %p2355_p7 = scmp.lt.s32.totalorder %s2614_s12, %s2353_s20 }
  0x46   : > { %p2350_p5 = pnand %p2348_p3, %p2304_p11  ;;  %p2356_p10 = scmp.lt.s32.totalorder %s2354_s23, %s2347_s13 }
  0x48   : > { %p2351_p6 = pneg %p2350_p5  ;;  %p2357_p12 = por %p2356_p10, %p2355_p7 }
  0x4a   : > { %p2358_p0 = pnand %p2357_p12, %p2351_p6 }
  0x4c   : > { %2361 = shalt.err (!%p2358_p0)
}
  0x4d   : > { %s2864_s18 = smov 128   ;;  %548 = sbr.rel (%p2601_p4) target bundleno = 1102 (0x44e), region = 72 }
  0x4e   : > { %2108 = dma.hbm_to_vmem [thread:$0]  (!%p2562_p9), %s2610_s7, 4096, %s2614_s12, %s505_s14, %s2864_s18, %s2864_s18, %s2420_s24  }
  0x4f   : > { %s550_s16 = sand.u32 (!%p2601_p4), 1, %s2400_s26   ;;  %p2865_p7 = scmp.ne.s32.totalorder (!%p2601_p4), %s2856_s19, 0 }
  0x50   : > { %s1967_s25 = sshll.u32 (!%p2601_p4), %s550_s16, 8  ;;  %s551_s22 = scalar_lea.sflag (!%p2601_p4), [#allocation3], %s550_s16 }
  0x51   : > { %s2648_s13 = scalar_lea.vmem (!%p2601_p4), [#allocation2], %s1967_s25 }
  0x54   : > { %2387 = dma.done.wait (%p2865_p7), %s551_s22, 4096  }
  0x55   : > { %2389 = vsyncadd (%p2865_p7), %s551_s22, 4294963200  ;;  %s560_s15 = scalar_lea.sflag [#allocation5], %s550_s16  ;;  %s2654_s21 = scalar_lea.vmem [#allocation4], %s1967_s25 }
  0x56   : > { %2391 = dma.done.wait (%p2865_p7), %s560_s15, 4096  }
  0x57   : > { %2393 = vsyncadd (%p2865_p7), %s560_s15, 4294963200  ;;  %p671_p9 = scmp.lt.s32.totalorder %s2408_s28, 1  ;;  %vm735_vm0 = vcmask 1040384   ;;  %vm798_vm1 = vcmask 1044480   ;;  %v2422_v0 = vmov 0   ;;  %vm736_vm2 = vcmask 1041408  }
  0x58   : > { %777 = vmatprep.mubr.bf16.mxu0 %v2422_v0  ;;  %v2423_v1 = vmov 65535   ;;  %v2424_v3 = vmov 1966171168   ;;  %v862_v5 = vlaneseq  ;;  %vm799_vm3 = vcmask 1045504   ;;  %v715_v15 = vld [vmem:[%s2831_s1] sm:$0xff] }
  0x59   : > { %s2878_s28 = smov (!%p671_p9, %s2408_s28), 1  ;;  %v737_v2 = vsel %vm735_vm0, 4294967295, %v2423_v1  ;;  %v860_v4 = vunpack.c.l.s4 %v2424_v3  ;;  %v800_v6 = vsel %vm798_vm1, 4294967295, %v2423_v1  ;;  %v2166_v22 = vld [vmem:[%s2648_s13 + $0x4] ss:$8 sps:$4 sm:$0xff]   ;;  %v716_v24 = vpack.c.bf16 %v715_v15, %v715_v15 }
  0x5a   : > { %s2074_s7 = sshll.u32 %s2878_s28, 2  ;;  %v738_v7 = vsel %vm736_vm2, %v737_v2, 0  ;;  %s2073_s17 = sshll.u32 %s2878_s28, 4  ;;  %v2673_v9 = vshrl.u32 %v862_v5, 7  ;;  %v801_v11 = vsel %vm799_vm3, %v800_v6, 0  ;;  %vm731_vm4 = vcmask 23552   ;;  %1178 = vmatprep.subr.bf16.mxu1 %v2166_v22 }
  0x5b   : > { %s680_s24 = scalar_lea.vmem %s2834_s4, %s2074_s7  ;;  %s2671_s14 = sshll.u32 %s2878_s28, 1  ;;  %v861_v8 = vunpack.c.0.s8 %v860_v4  ;;  %v2168_v23 = vld [vmem:[%s2648_s13] ss:$8 sps:$4 sm:$0xff]   ;;  %vm794_vm5 = vcmask 89088   ;;  %vm873_vm6 = vcmask 15360   ;;  %vm1707_vm13 = vcmask 7168  }
  0x5c   : > { %v1980_v10 = vld.sshfl [vmem:[%s680_s24] sm:$0x33 pattern:$0x76325410]  ;;  %s675_s23 = scalar_lea.vmem %s2833_s3, %s2073_s17  ;;  %s684_s25 = scalar_lea.vmem %s2835_s5, %s2671_s14  ;;  %1179 = vmatpush1.bf16.msra.mxu1 %v2168_v23  ;;  %v2169_v33 = vld [vmem:[%s2648_s13 + $0x14] ss:$8 sps:$4 sm:$0xff]  }
  0x5d   : > { %v730_v12 = vcombine.high %v1980_v10, %v1980_v10  ;;  %v2163_v13 = vld [vmem:[%s675_s23] ss:$8 sps:$4 sm:$0x3f]   ;;  %v740_v14 = vand.u32 %v1980_v10, %v738_v7  ;;  %v2165_v16 = vld [vmem:[%s675_s23 + $0x4] ss:$8 sps:$4 sm:$0x3f]   ;;  %v864_v19 = vsub.s32 %v861_v8, %v2673_v9  ;;  %1180 = vmatprep.subr.bf16.mxu1 %v2169_v33  ;;  %s688_s16 = scalar_lea.vmem %s2836_s6, %s2671_s14  ;;  %s692_s15 = scalar_lea.vmem %s2838_s8, %s2671_s14 }
  0x5e   : > { %v1985_v18 = vld.sshfl [vmem:[%s684_s25] sm:$0x11 pattern:$0x75316420]  ;;  %v806_v20 = vand.u32 %v2165_v16, %v801_v11  ;;  %v803_v25 = vand.u32 %v2163_v13, %v801_v11  ;;  %s2075_s17 = sshll.u32 %s2878_s28, 7  ;;  %v2750_v22 = vsub.s32 1, %v2673_v9  ;;  %s696_s12 = scalar_lea.vmem %s2840_s10, %s2671_s14 }
  0x5f   : > { %v743_v17 = vand.u32 %v738_v7, %v730_v12  ;;  %v858_v21 = vcombine.high %v1985_v18, %v1985_v18  ;;  %v713_v27 = vld [vmem:[%s2830_s0] sm:$0xff]  ;;  %v865_v28 = vrot.slane %v1985_v18, %v864_v19  ;;  %s2700_s23 = scalar_lea.vmem %s2841_s11, %s2075_s17  ;;  %v2171_v34 = vld [vmem:[%s2648_s13 + $0x10] ss:$8 sps:$4 sm:$0xff]   ;;  %v2175_v37 = vld [vmem:[%s2648_s13 + $0x34] ss:$8 sps:$4 sm:$0xff]   ;;  %s2866_s24 = sld [smem:[#allocation12_spill]] }
  0x60   : > { %v714_v29 = vpack.c.bf16 %v713_v27, %v713_v27  ;;  %v717_v31 = vld [vmem:[%s2832_s2] sm:$0xff]  ;;  %1181 = vmatpush1.bf16.msra.mxu1 %v2171_v34  ;;  %v2177_v38 = vld [vmem:[%s2648_s13 + $0x30] ss:$8 sps:$4 sm:$0xff]   ;;  %v2181_v41 = vld [vmem:[%s2648_s13 + $0x54] ss:$8 sps:$4 sm:$0xff]   ;;  %s1979_s27 = sshll.u32 %s2878_s28, 3 }
  0x61   : > { %745 = vmatprep.subr.bf16.mxu0 %v743_v17  ;;  %v872_v26 = vrot.slane %v858_v21, %v864_v19  ;;  %v878_v30 = vsel %vm735_vm0, %v865_v28, 0  ;;  %v718_v32 = vpack.c.bf16 %v717_v31, %v717_v31  ;;  %v2172_v35 = vld [vmem:[%s2648_s13 + $0x24] ss:$8 sps:$4 sm:$0xff]   ;;  %v2174_v36 = vld [vmem:[%s2648_s13 + $0x20] ss:$8 sps:$4 sm:$0xff]  }
  0x62   : > { %746 = vmatpush1.bf16.msra.mxu0 %v740_v14  ;;  %1182 = vmatprep.subr.bf16.mxu1 %v2172_v35  ;;  %v2178_v39 = vld [vmem:[%s2648_s13 + $0x44] ss:$8 sps:$4 sm:$0xff]   ;;  %v2180_v40 = vld [vmem:[%s2648_s13 + $0x40] ss:$8 sps:$4 sm:$0xff]   ;;  %v2183_v42 = vld [vmem:[%s2648_s13 + $0x50] ss:$8 sps:$4 sm:$0xff]  }
  0x63   : > { %808 = vmatprep.subr.bf16.mxu0 %v806_v20  ;;  %v2184_v43 = vld [vmem:[%s2648_s13 + $0x64] ss:$8 sps:$4 sm:$0xff]   ;;  %v2186_v44 = vld [vmem:[%s2648_s13 + $0x60] ss:$8 sps:$4 sm:$0xff]   ;;  %v2187_v45 = vld [vmem:[%s2648_s13 + $0x74] ss:$8 sps:$4 sm:$0xff]  }
  0x64   : > { %1183 = vmatpush1.bf16.msra.mxu1 %v2174_v36  ;;  %v2189_v46 = vld [vmem:[%s2648_s13 + $0x70] ss:$8 sps:$4 sm:$0xff]   ;;  %v2190_v47 = vld [vmem:[%s2648_s13 + $0x84] ss:$8 sps:$4 sm:$0xff]   ;;  %v2192_v48 = vld [vmem:[%s2648_s13 + $0x80] ss:$8 sps:$4 sm:$0xff]  }
  0x65   : > { %1981 = vmatmul.mubr.msk.bf16.vlgmr.msra.gmra.mrb[0].mxu0 %vm731_vm4, %v716_v24  ;;  %1184 = vmatprep.subr.bf16.mxu1 %v2175_v37  ;;  %v2193_v49 = vld [vmem:[%s2648_s13 + $0x94] ss:$8 sps:$4 sm:$0xff]   ;;  %v2195_v50 = vld [vmem:[%s2648_s13 + $0x90] ss:$8 sps:$4 sm:$0xff]   ;;  %v2196_v51 = vld [vmem:[%s2648_s13 + $0xa4] ss:$8 sps:$4 sm:$0xff]   ;;  %s704_s17 = scalar_lea.vmem %s2866_s24, %s2878_s28 }
  0x66   : > { %809 = vmatpush1.bf16.msra.mxu0 %v803_v25  ;;  %840 = vmatprep.mubr.bf16.mxu0 %v2422_v0  ;;  %v2198_v52 = vld [vmem:[%s2648_s13 + $0xa0] ss:$8 sps:$4 sm:$0xff]   ;;  %v2199_v53 = vld [vmem:[%s2648_s13 + $0xb4] ss:$8 sps:$4 sm:$0xff]   ;;  %v2201_v54 = vld [vmem:[%s2648_s13 + $0xb0] ss:$8 sps:$4 sm:$0xff]  }
  0x67   : > { %1986 = vmatprep.subr.msk.bf16.mxu0 %vm735_vm0, %v872_v26  ;;  %v2202_v55 = vld [vmem:[%s2648_s13 + $0xc4] ss:$8 sps:$4 sm:$0xff]   ;;  %v2204_v56 = vld [vmem:[%s2648_s13 + $0xc0] ss:$8 sps:$4 sm:$0xff]   ;;  %v2205_v57 = vld [vmem:[%s2648_s13 + $0xd4] ss:$8 sps:$4 sm:$0xff]  }
  0x68   : > { %1185 = vmatpush1.bf16.msra.mxu1 %v2177_v38  ;;  %v2207_v58 = vld [vmem:[%s2648_s13 + $0xd0] ss:$8 sps:$4 sm:$0xff]   ;;  %v2208_v59 = vld [vmem:[%s2648_s13 + $0xe4] ss:$8 sps:$4 sm:$0xff]   ;;  %v2210_v60 = vld [vmem:[%s2648_s13 + $0xe0] ss:$8 sps:$4 sm:$0xff]  }
  0x69   : > { %1186 = vmatprep.subr.bf16.mxu1 %v2178_v39  ;;  %v2211_v61 = vld [vmem:[%s2648_s13 + $0xf4] ss:$8 sps:$4 sm:$0xff]   ;;  %v2213_v62 = vld [vmem:[%s2648_s13 + $0xf0] ss:$8 sps:$4 sm:$0xff]   ;;  %v2214_v63 = vld [vmem:[%s2654_s21] ss:$8 sps:$4 sm:$0xff]  }
  0x6a   : > { %v2219_v1 = vld [vmem:[%s2654_s21 + $0x14] ss:$8 sps:$4 sm:$0xff]   ;;  %v2217_v2 = vld [vmem:[%s2654_s21 + $0x10] ss:$8 sps:$4 sm:$0xff]   ;;  %v2222_v3 = vld [vmem:[%s2654_s21 + $0x24] ss:$8 sps:$4 sm:$0xff]  }
  0x6b   : > { %v2220_v4 = vld [vmem:[%s2654_s21 + $0x20] ss:$8 sps:$4 sm:$0xff]   ;;  %v2225_v5 = vld [vmem:[%s2654_s21 + $0x34] ss:$8 sps:$4 sm:$0xff]   ;;  %v2223_v6 = vld [vmem:[%s2654_s21 + $0x30] ss:$8 sps:$4 sm:$0xff]  }
  0x6c   : > { %1187 = vmatpush1.bf16.msra.mxu1 %v2180_v40  ;;  %v2228_v7 = vld [vmem:[%s2654_s21 + $0x44] ss:$8 sps:$4 sm:$0xff]   ;;  %v2226_v8 = vld [vmem:[%s2654_s21 + $0x40] ss:$8 sps:$4 sm:$0xff]   ;;  %v2747_v20 = vsub.s32 0, %v2673_v9  ;;  %s2867_s13 = sld [smem:[#allocation13_spill]] }
  0x6d   : > { %1984 = vmatmul.mubr.msk.bf16.vlgmr.msra.gmra.mrb[4].mxu0 %vm794_vm5, %v714_v29  ;;  %1188 = vmatprep.subr.bf16.mxu1 %v2181_v41  ;;  %v926_v21 = vld [vmem:[%s688_s16] sm:$0x3] }
  0x6e   : > { %884 = vmatpush1.bf16.msra.mxu0 %v878_v30  ;;  %915 = vmatprep.mubr.bf16.mxu0 %v2422_v0  ;;  %v2216_v0 = vld [vmem:[%s2654_s21 + $0x4] ss:$8 sps:$4 sm:$0xff]   ;;  %v931_v23 = vrot.slane %v926_v21, %v2747_v20  ;;  %v935_v25 = vrot.slane %v926_v21, %v2750_v22  ;;  %v2256_v21 = vld [vmem:[%s2654_s21 + $0xe0] ss:$8 sps:$4 sm:$0xff]  }
  0x6f   : > { %1457 = vmatprep.subr.bf16.mxu0 %v2216_v0  ;;  %v2231_v0 = vld [vmem:[%s2654_s21 + $0x54] ss:$8 sps:$4 sm:$0xff]  }
  0x70   : > { %1189 = vmatpush1.bf16.msra.mxu1 %v2183_v42 }
  0x71   : > { %1190 = vmatprep.subr.bf16.mxu1 %v2184_v43 }
  0x72   : > { %s711_s18 = scalar_lea.vmem %s2867_s13, %s1979_s27 }
  0x74   : > { %1191 = vmatpush1.bf16.msra.mxu1 %v2186_v44 }
  0x75   : > { %1987 = vmatmul.mubr.msk.bf16.vlgmr.msra.gmra.mrb[8].mxu0 %vm873_vm6, %v718_v32  ;;  %1192 = vmatprep.subr.bf16.mxu1 %v2187_v45 }
  0x76   : > { %1458 = vmatpush1.bf16.msra.mxu0 %v2214_v63 }
  0x77   : > { %1459 = vmatprep.subr.bf16.mxu0 %v2219_v1  ;;  %v2229_v1 = vld [vmem:[%s2654_s21 + $0x50] ss:$8 sps:$4 sm:$0xff]  }
  0x78   : > { %1193 = vmatpush1.bf16.msra.mxu1 %v2189_v46 }
  0x79   : > { %1194 = vmatprep.subr.bf16.mxu1 %v2190_v47 }
  0x7a   : > { %1460 = vmatpush1.bf16.msra.mxu0 %v2217_v2  ;;  %v2234_v2 = vld [vmem:[%s2654_s21 + $0x64] ss:$8 sps:$4 sm:$0xff]  }
  0x7b   : > { %1461 = vmatprep.subr.bf16.mxu0 %v2222_v3  ;;  %v2232_v3 = vld [vmem:[%s2654_s21 + $0x60] ss:$8 sps:$4 sm:$0xff]  }
  0x7c   : > { %1195 = vmatpush1.bf16.msra.mxu1 %v2192_v48 }
  0x7d   : > { %1196 = vmatprep.subr.bf16.mxu1 %v2193_v49 }
  0x7e   : > { %1462 = vmatpush1.bf16.msra.mxu0 %v2220_v4  ;;  %v2237_v4 = vld [vmem:[%s2654_s21 + $0x74] ss:$8 sps:$4 sm:$0xff]  }
  0x7f   : > { %1463 = vmatprep.subr.bf16.mxu0 %v2225_v5  ;;  %v2235_v5 = vld [vmem:[%s2654_s21 + $0x70] ss:$8 sps:$4 sm:$0xff]  }
  0x80   : > { %1197 = vmatpush1.bf16.msra.mxu1 %v2195_v50 }
  0x81   : > { %1198 = vmatprep.subr.bf16.mxu1 %v2196_v51 }
  0x82   : > { %1464 = vmatpush1.bf16.msra.mxu0 %v2223_v6  ;;  %v2240_v6 = vld [vmem:[%s2654_s21 + $0x84] ss:$8 sps:$4 sm:$0xff]  }
  0x83   : > { %1465 = vmatprep.subr.bf16.mxu0 %v2228_v7  ;;  %v2238_v7 = vld [vmem:[%s2654_s21 + $0x80] ss:$8 sps:$4 sm:$0xff]  }
  0x84   : > { %1199 = vmatpush1.bf16.msra.mxu1 %v2198_v52 }
  0x85   : > { %1200 = vmatprep.subr.bf16.mxu1 %v2199_v53 }
  0x86   : > { %1466 = vmatpush1.bf16.msra.mxu0 %v2226_v8  ;;  %v2243_v8 = vld [vmem:[%s2654_s21 + $0x94] ss:$8 sps:$4 sm:$0xff]  }
  0x87   : > { %1467 = vmatprep.subr.bf16.mxu0 %v2231_v0 }
  0x88   : > { %1201 = vmatpush1.bf16.msra.mxu1 %v2201_v54 }
  0x89   : > { %1202 = vmatprep.subr.bf16.mxu1 %v2202_v55 }
  0x8a   : > { %1468 = vmatpush1.bf16.msra.mxu0 %v2229_v1  ;;  %v2262_v1 = vld [vmem:[%s2700_s23 + $0x40] sm:$0xff]  }
  0x8b   : > { %1469 = vmatprep.subr.bf16.mxu0 %v2234_v2  ;;  %v2263_v2 = vld [vmem:[%s2700_s23] sm:$0xff]  }
  0x8c   : > { %1203 = vmatpush1.bf16.msra.mxu1 %v2204_v56 }
  0x8d   : > { %1204 = vmatprep.subr.bf16.mxu1 %v2205_v57 }
  0x8e   : > { %1470 = vmatpush1.bf16.msra.mxu0 %v2232_v3  ;;  %v2264_v3 = vld [vmem:[%s2700_s23 + $0x48] sm:$0xff]  }
  0x8f   : > { %1471 = vmatprep.subr.bf16.mxu0 %v2237_v4  ;;  %v2265_v4 = vld [vmem:[%s2700_s23 + $0x8] sm:$0xff]  }
  0x90   : > { %1205 = vmatpush1.bf16.msra.mxu1 %v2207_v58 }
  0x91   : > { %1206 = vmatprep.subr.bf16.mxu1 %v2208_v59 }
  0x92   : > { %1472 = vmatpush1.bf16.msra.mxu0 %v2235_v5  ;;  %v2266_v5 = vld [vmem:[%s2700_s23 + $0x50] sm:$0xff]  }
  0x93   : > { %1473 = vmatprep.subr.bf16.mxu0 %v2240_v6  ;;  %v2267_v6 = vld [vmem:[%s2700_s23 + $0x10] sm:$0xff]  }
  0x94   : > { %1207 = vmatpush1.bf16.msra.mxu1 %v2210_v60 }
  0x95   : > { %1208 = vmatprep.subr.bf16.mxu1 %v2211_v61 }
  0x96   : > { %1474 = vmatpush1.bf16.msra.mxu0 %v2238_v7  ;;  %v2268_v7 = vld [vmem:[%s2700_s23 + $0x58] sm:$0xff]  }
  0x97   : > { %1475 = vmatprep.subr.bf16.mxu0 %v2243_v8  ;;  %v2269_v8 = vld [vmem:[%s2700_s23 + $0x18] sm:$0xff]  }
  0x98   : > { %1209 = vmatpush1.bf16.msra.mxu1 %v2213_v62 }
  0x99   : > { %2076 = vmatprep.subr.bf16.mxu1 %v2262_v1 }
 0x138   : > { %v779_v10 = vpop.f32.mrb[0].mxu0 }
 0x139   : > { %v781_v11 = vpop.f32.mrb[1].mxu0 }
 0x13a   : > { %v783_v12 = vpop.f32.mrb[2].mxu0 }
 0x13b   : > { %v784_v13 = vpop.f32.mrb[3].mxu0  ;;  %v2244_v12 = vld [vmem:[%s2654_s21 + $0xa0] ss:$8 sps:$4 sm:$0xff]  }
 0x13c   : > { %v2249_v13 = vld [vmem:[%s2654_s21 + $0xb4] ss:$8 sps:$4 sm:$0xff]  }
 0x140   : > { %v842_v14 = vpop.f32.mrb[4].mxu0 }
 0x141   : > { %v843_v15 = vadd.f32 %v842_v14, %v779_v10  ;;  %v844_v16 = vpop.f32.mrb[5].mxu0  ;;  %v2241_v10 = vld [vmem:[%s2654_s21 + $0x90] ss:$8 sps:$4 sm:$0xff]  }
 0x142   : > { %v845_v17 = vadd.f32 %v844_v16, %v781_v11  ;;  %v846_v18 = vpop.f32.mrb[6].mxu0  ;;  %1476 = vmatpush1.bf16.msra.mxu0 %v2241_v10  ;;  %v2246_v11 = vld [vmem:[%s2654_s21 + $0xa4] ss:$8 sps:$4 sm:$0xff]   ;;  %v2247_v14 = vld [vmem:[%s2654_s21 + $0xb0] ss:$8 sps:$4 sm:$0xff]  }
 0x143   : > { %v847_v19 = vpop.f32.mrb[7].mxu0  ;;  %1477 = vmatprep.subr.bf16.mxu0 %v2246_v11  ;;  %v2250_v16 = vld [vmem:[%s2654_s21 + $0xc0] ss:$8 sps:$4 sm:$0xff]   ;;  %v2253_v18 = vld [vmem:[%s2654_s21 + $0xd0] ss:$8 sps:$4 sm:$0xff]  }
 0x144   : > { %v2258_v19 = vld [vmem:[%s2654_s21 + $0xe4] ss:$8 sps:$4 sm:$0xff]  }
 0x145   : > { %v2270_v10 = vld [vmem:[%s2700_s23 + $0x60] sm:$0xff]  }
 0x146   : > { %1478 = vmatpush1.bf16.msra.mxu0 %v2244_v12  ;;  %v2271_v11 = vld [vmem:[%s2700_s23 + $0x20] sm:$0xff]   ;;  %v2272_v12 = vld [vmem:[%s2700_s23 + $0x68] sm:$0xff]  }
 0x147   : > { %1479 = vmatprep.subr.bf16.mxu0 %v2249_v13  ;;  %v2273_v13 = vld [vmem:[%s2700_s23 + $0x28] sm:$0xff]  }
 0x148   : > { %v917_v24 = vpop.f32.mrb[8].mxu0 }
 0x149   : > { %v924_v26 = vadd.f32 %v917_v24, %v843_v15  ;;  %v919_v27 = vpop.f32.mrb[9].mxu0  ;;  %v2252_v15 = vld [vmem:[%s2654_s21 + $0xc4] ss:$8 sps:$4 sm:$0xff]   ;;  %v2261_v24 = vld [vmem:[%s2654_s21 + $0xf4] ss:$8 sps:$4 sm:$0xff]  }
 0x14a   : > { %v925_v28 = vadd.f32 %v919_v27, %v845_v17  ;;  %v921_v29 = vpop.f32.mrb[10].mxu0  ;;  %1480 = vmatpush1.bf16.msra.mxu0 %v2247_v14  ;;  %v2255_v17 = vld [vmem:[%s2654_s21 + $0xd4] ss:$8 sps:$4 sm:$0xff]  }
 0x14b   : > { %v938_v30 = vadd.f32 %v931_v23, %v924_v26  ;;  %v922_v31 = vpop.f32.mrb[11].mxu0  ;;  %1481 = vmatprep.subr.bf16.mxu0 %v2252_v15  ;;  %v2259_v23 = vld [vmem:[%s2654_s21 + $0xf0] ss:$8 sps:$4 sm:$0xff]  }
 0x14c   : > { %v939_v32 = vadd.f32 %v935_v25, %v925_v28  ;;  %v1006_v25 = vld [vmem:[%s692_s15] sm:$0x3]  ;;  %v2274_v14 = vld [vmem:[%s2700_s23 + $0x70] sm:$0xff]  }
 0x14d   : > { %v940_v33 = vand.u32 2147483647, %v938_v30  ;;  %vm948_vm7 = vcmp.ge.f32.partialorder %v938_v30, 0.0  ;;  %v1011_v26 = vrot.slane %v1006_v25, %v2747_v20  ;;  %v1015_v27 = vrot.slane %v1006_v25, %v2750_v22  ;;  %v2275_v15 = vld [vmem:[%s2700_s23 + $0x30] sm:$0xff]  }
 0x14e   : > { %v941_v34 = vand.u32 2147483647, %v939_v32  ;;  %vm949_vm8 = vcmp.ge.f32.partialorder %v939_v32, 0.0  ;;  %1482 = vmatpush1.bf16.msra.mxu0 %v2250_v16  ;;  %v2276_v16 = vld [vmem:[%s2700_s23 + $0x78] sm:$0xff]  }
 0x14f   : > { %v942_v35 = vsub.f32 0.0, %v940_v33  ;;  %1483 = vmatprep.subr.bf16.mxu0 %v2255_v17  ;;  %v2277_v17 = vld [vmem:[%s2700_s23 + $0x38] sm:$0xff]  }
 0x150   : > { %v943_v36 = vsub.f32 0.0, %v941_v34 }
 0x151   : > { %v944_v37 = vmul.f32 1.442695, %v942_v35 }
 0x152   : > { %v946_v38 = vmul.f32 1.442695, %v943_v36  ;;  %1484 = vmatpush1.bf16.msra.mxu0 %v2253_v18  ;;  %v1285_v18 = vld [vmem:[%s696_s12] sm:$0x3] }
 0x153   : > { %2278 = vpow2.f32 %v944_v37  ;;  %1485 = vmatprep.subr.bf16.mxu0 %v2258_v19  ;;  %v1290_v19 = vrot.slane %v1285_v18, %v2747_v20 }
 0x154   : > { %2280 = vpow2.f32 %v946_v38 }
 0x156   : > { %1486 = vmatpush1.bf16.msra.mxu0 %v2256_v21  ;;  %v1294_v21 = vrot.slane %v1285_v18, %v2750_v22 }
 0x157   : > { %1487 = vmatprep.subr.bf16.mxu0 %v2261_v24 }
 0x15a   : > { %1488 = vmatpush1.bf16.msra.mxu0 %v2259_v23 }
 0x15d   : > { %v2279_v9 = vpop.eup %2278 }
 0x15e   : > { %v2281_v39 = vpop.eup %2280  ;;  %v952_v40 = vmul.f32 %v2279_v9, %v2279_v9  ;;  %v950_v41 = vmul.f32 2.0, %v2279_v9 }
 0x15f   : > { %v951_v42 = vmul.f32 2.0, %v2281_v39  ;;  %v953_v43 = vmul.f32 %v2281_v39, %v2281_v39 }
 0x160   : > { %v960_v44 = vmul.f32 2.0, %v952_v40  ;;  %v954_v45 = vadd.f32 1.0, %v950_v41  ;;  %v956_v46 = vadd.f32 %v952_v40, %v950_v41 }
 0x161   : > { %v955_v47 = vadd.f32 1.0, %v951_v42  ;;  %v957_v48 = vadd.f32 %v953_v43, %v951_v42  ;;  %v961_v49 = vmul.f32 2.0, %v953_v43 }
 0x162   : > { %v962_v50 = vsel %vm948_vm7, %v960_v44, 2.0  ;;  %v958_v51 = vsel %vm948_vm7, %v954_v45, %v956_v46 }
 0x163   : > { %v959_v52 = vsel %vm949_vm8, %v955_v47, %v957_v48  ;;  %v963_v53 = vsel %vm949_vm8, %v961_v49, 2.0  ;;  %v964_v54 = vadd.f32 %v962_v50, %v958_v51  ;;  %v966_v56 = vmul.f32 %v958_v51, %v938_v30 }
 0x164   : > { %v965_v55 = vadd.f32 %v963_v53, %v959_v52  ;;  %v967_v58 = vmul.f32 %v959_v52, %v939_v32 }
 0x165   : > { %2282 = vrcp.f32 %v964_v54 }
 0x166   : > { %2284 = vrcp.f32 %v965_v55 }
 0x16f   : > { %v2283_v57 = vpop.eup %2282 }
 0x170   : > { %v2285_v59 = vpop.eup %2284  ;;  %v970_v60 = vmul.f32 %v2283_v57, %v966_v56 }
 0x171   : > { %v971_v61 = vmul.f32 %v2285_v59, %v967_v58 }
 0x172   : > { %v972_v63 = vpack.c.bf16 %v970_v60, %v970_v60 }
 0x173   : > { %v973_v62 = vpack.c.bf16 %v971_v61, %v971_v61 }
 0x175   : > { %1210 = vmatprep.mubr.bf16.mxu1 %v973_v62 }
 0x176   : > { %1211 = vmatmul.mubr.bf16.vlgmr.msra.gmra.mrb[0].mxu1 %v972_v63 }
 0x177   : > { %2077 = vmatpush3.bf16.msra.mxu1 %v2263_v2 }
 0x178   : > { %2078 = vmatprep.subr.bf16.mxu1 %v2264_v3 }
 0x17b   : > { %2079 = vmatpush3.bf16.msra.mxu1 %v2265_v4 }
 0x17c   : > { %2080 = vmatprep.subr.bf16.mxu1 %v2266_v5 }
 0x17f   : > { %2081 = vmatpush3.bf16.msra.mxu1 %v2267_v6 }
 0x180   : > { %2082 = vmatprep.subr.bf16.mxu1 %v2268_v7 }
 0x183   : > { %2083 = vmatpush3.bf16.msra.mxu1 %v2269_v8 }
 0x184   : > { %2084 = vmatprep.subr.bf16.mxu1 %v2270_v10 }
 0x187   : > { %2085 = vmatpush3.bf16.msra.mxu1 %v2271_v11 }
 0x188   : > { %2086 = vmatprep.subr.bf16.mxu1 %v2272_v12 }
 0x18b   : > { %2087 = vmatpush3.bf16.msra.mxu1 %v2273_v13 }
 0x18c   : > { %2088 = vmatprep.subr.bf16.mxu1 %v2274_v14 }
 0x18f   : > { %2089 = vmatpush3.bf16.msra.mxu1 %v2275_v15 }
 0x190   : > { %2090 = vmatprep.subr.bf16.mxu1 %v2276_v16 }
 0x193   : > { %2091 = vmatpush3.bf16.msra.mxu1 %v2277_v17 }
 0x249   : > { %v1212_v28 = vpop.f32.mrb[0].mxu1 }
 0x24a   : > { %v1213_v29 = vadd.f32 %v1212_v28, %v1011_v26  ;;  %v1214_v30 = vpop.f32.mrb[1].mxu1 }
 0x24b   : > { %v1215_v31 = vadd.f32 %v1214_v30, %v1015_v27  ;;  %v1216_v32 = vpop.f32.mrb[2].mxu1 }
 0x24c   : > { %v1219_v33 = vand.u32 2147483647, %v1213_v29  ;;  %v1217_v34 = vpop.f32.mrb[3].mxu1  ;;  %vm1227_vm9 = vcmp.ge.f32.partialorder %v1213_v29, 0.0 }
 0x24d   : > { %v1220_v35 = vand.u32 2147483647, %v1215_v31  ;;  %vm1228_vm10 = vcmp.ge.f32.partialorder %v1215_v31, 0.0 }
 0x24e   : > { %v1221_v36 = vsub.f32 0.0, %v1219_v33 }
 0x24f   : > { %v1222_v37 = vsub.f32 0.0, %v1220_v35 }
 0x250   : > { %v1223_v38 = vmul.f32 1.442695, %v1221_v36 }
 0x251   : > { %v1225_v9 = vmul.f32 1.442695, %v1222_v37 }
 0x252   : > { %2286 = vpow2.f32 %v1223_v38 }
 0x253   : > { %2288 = vpow2.f32 %v1225_v9 }
 0x25c   : > { %v2287_v39 = vpop.eup %2286 }
 0x25d   : > { %v2289_v40 = vpop.eup %2288  ;;  %v1229_v41 = vmul.f32 2.0, %v2287_v39  ;;  %v1231_v42 = vmul.f32 %v2287_v39, %v2287_v39 }
 0x25e   : > { %v1230_v43 = vmul.f32 2.0, %v2289_v40  ;;  %v1232_v44 = vmul.f32 %v2289_v40, %v2289_v40 }
 0x25f   : > { %v1233_v45 = vadd.f32 1.0, %v1229_v41  ;;  %v1235_v46 = vadd.f32 %v1231_v42, %v1229_v41  ;;  %v1239_v47 = vmul.f32 2.0, %v1231_v42 }
 0x260   : > { %v1234_v48 = vadd.f32 1.0, %v1230_v43  ;;  %v1236_v49 = vadd.f32 %v1232_v44, %v1230_v43  ;;  %v1240_v50 = vmul.f32 2.0, %v1232_v44 }
 0x261   : > { %v1237_v51 = vsel %vm1227_vm9, %v1233_v45, %v1235_v46  ;;  %v1241_v52 = vsel %vm1227_vm9, %v1239_v47, 2.0 }
 0x262   : > { %v1243_v53 = vadd.f32 %v1241_v52, %v1237_v51  ;;  %v1238_v54 = vsel %vm1228_vm10, %v1234_v48, %v1236_v49  ;;  %v1242_v55 = vsel %vm1228_vm10, %v1240_v50, 2.0  ;;  %v1245_v57 = vmul.f32 %v1237_v51, %v1213_v29 }
 0x263   : > { %v1244_v56 = vadd.f32 %v1242_v55, %v1238_v54  ;;  %v1246_v59 = vmul.f32 %v1238_v54, %v1215_v31 }
 0x264   : > { %2290 = vrcp.f32 %v1243_v53 }
 0x265   : > { %2292 = vrcp.f32 %v1244_v56 }
 0x26e   : > { %v2291_v58 = vpop.eup %2290 }
 0x26f   : > { %v2293_v60 = vpop.eup %2292  ;;  %v1249_v61 = vmul.f32 %v2291_v58, %v1245_v57 }
 0x270   : > { %v1250_v62 = vmul.f32 %v2293_v60, %v1246_v59  ;;  %v2052_v59 = vld [vmem:[%s704_s17] ss:$0 sm:$0xff] }
 0x271   : > { %v1251_v0 = vpack.c.bf16 %v1249_v61, %v1249_v61 }
 0x272   : > { %v1252_v63 = vpack.c.bf16 %v1250_v62, %v1250_v62 }
 0x274   : > { %1489 = vmatprep.mubr.bf16.mxu0 %v1252_v63 }
 0x275   : > { %1490 = vmatmul.mubr.bf16.vlgmr.msra.gmra.mrb[12].mxu0 %v1251_v0 }
 0x348   : > { %v1491_v23 = vpop.f32.mrb[12].mxu0 }
 0x349   : > { %v1492_v24 = vadd.f32 %v1491_v23, %v1290_v19  ;;  %v1493_v25 = vpop.f32.mrb[13].mxu0 }
 0x34a   : > { %v1494_v26 = vadd.f32 %v1493_v25, %v1294_v21  ;;  %v1495_v27 = vpop.f32.mrb[14].mxu0 }
 0x34b   : > { %v1498_v28 = vand.u32 2147483647, %v1492_v24  ;;  %v1496_v29 = vpop.f32.mrb[15].mxu0  ;;  %vm1506_vm11 = vcmp.ge.f32.partialorder %v1492_v24, 0.0 }
 0x34c   : > { %v1499_v30 = vand.u32 2147483647, %v1494_v26  ;;  %vm1507_vm12 = vcmp.ge.f32.partialorder %v1494_v26, 0.0 }
 0x34d   : > { %v1500_v31 = vsub.f32 0.0, %v1498_v28 }
 0x34e   : > { %v1501_v32 = vsub.f32 0.0, %v1499_v30 }
 0x34f   : > { %v1502_v33 = vmul.f32 1.442695, %v1500_v31 }
 0x350   : > { %v1504_v34 = vmul.f32 1.442695, %v1501_v32 }
 0x351   : > { %2294 = vpow2.f32 %v1502_v33 }
 0x352   : > { %2296 = vpow2.f32 %v1504_v34 }
 0x35b   : > { %v2295_v35 = vpop.eup %2294 }
 0x35c   : > { %v2297_v36 = vpop.eup %2296  ;;  %v1508_v37 = vmul.f32 2.0, %v2295_v35  ;;  %v1510_v20 = vmul.f32 %v2295_v35, %v2295_v35 }
 0x35d   : > { %v1509_v38 = vmul.f32 2.0, %v2297_v36  ;;  %v1511_v22 = vmul.f32 %v2297_v36, %v2297_v36 }
 0x35e   : > { %v1512_v9 = vadd.f32 1.0, %v1508_v37  ;;  %v1514_v39 = vadd.f32 %v1510_v20, %v1508_v37  ;;  %v1518_v40 = vmul.f32 2.0, %v1510_v20 }
 0x35f   : > { %v1513_v41 = vadd.f32 1.0, %v1509_v38  ;;  %v1515_v42 = vadd.f32 %v1511_v22, %v1509_v38  ;;  %v1519_v43 = vmul.f32 2.0, %v1511_v22 }
 0x360   : > { %v1516_v44 = vsel %vm1506_vm11, %v1512_v9, %v1514_v39  ;;  %v1520_v45 = vsel %vm1506_vm11, %v1518_v40, 2.0 }
 0x361   : > { %v1522_v46 = vadd.f32 %v1520_v45, %v1516_v44  ;;  %v1517_v47 = vsel %vm1507_vm12, %v1513_v41, %v1515_v42  ;;  %v1521_v48 = vsel %vm1507_vm12, %v1519_v43, 2.0  ;;  %v1524_v50 = vmul.f32 %v1516_v44, %v1492_v24 }
 0x362   : > { %v1523_v49 = vadd.f32 %v1521_v48, %v1517_v47  ;;  %v1525_v52 = vmul.f32 %v1517_v47, %v1494_v26 }
 0x363   : > { %2298 = vrcp.f32 %v1522_v46 }
 0x364   : > { %2300 = vrcp.f32 %v1523_v49 }
 0x36d   : > { %v2299_v51 = vpop.eup %2298 }
 0x36e   : > { %v2301_v53 = vpop.eup %2300  ;;  %v1528_v54 = vmul.f32 %v2299_v51, %v1524_v50 }
 0x36f   : > { %v1529_v55 = vmul.f32 %v2301_v53, %v1525_v52 }
 0x370   : > { %v1530_v57 = vpack.c.bf16 %v1528_v54, %v1528_v54 }
 0x371   : > { %v1531_v56 = vpack.c.bf16 %v1529_v55, %v1529_v55 }
 0x373   : > { %1699 = vmatprep.mubr.bf16.mxu1 %v1531_v56 }
 0x374   : > { %1700 = vmatmul.mubr.bf16.vlgmr.msra.gmra.mrb[4].mxu1 %v1530_v57 }
 0x447   : > { %v2092_v58 = vpop.f32.mrb[4].mxu1 }
 0x448   : > { %v2093_v60 = vpop.f32.mrb[5].mxu1 }
 0x449   : > { %v2094_v61 = vadd.f32 %v2093_v60, %v2092_v58  ;;  %v2095_v62 = vpop.f32.mrb[6].mxu1 }
 0x44a   : > { %v2096_v63 = vpop.f32.mrb[7].mxu1 }
 0x44b   : > { %v1702_v0 = vadd.f32 %v2094_v61, %v2052_v59 }
 0x44d   : > { %1708 = vst.msk [vmem:[%s711_s18] sm:$0xff] %vm1707_vm13, %v1702_v0 }
 0x44e PF: > { %s29_s30 = sadd.s32 1, %s2416_s30   ;;  %s2868_s16 = sld [smem:[#allocation8_spill]] }
 0x44f   : > { %p26_p11 = scmp.ge.s32.totalorder %s29_s30, 4   ;;  %s2869_s27 = sld [smem:[#allocation10_spill]] }
 0x450   : > { %s2870_s22 = sld [smem:[#allocation9_spill]]  ;;  %s2871_s25 = smov %s2400_s26 }
 0x451   : > { %s2873_s28 = smov %s2412_s29  ;;  %28 = sbr.rel (!%p26_p11) target bundleno = 10 (0xa), region = 158 }
 0x454   : > { %s2872_s26 = smov %s2868_s16 }
 0x456   : > { %s2874_s29 = smov %s2870_s22 }
 0x458   :  { %1734 = vsyncpa [#allocation3], 1 }
 0x459   :  { %1736 = vsyncpa [#allocation3 + $0x1], 1 }
 0x45a   :  { %1737 = vsyncpa [#allocation5], 1 }
 0x45b   :  { %1739 = vsyncpa [#allocation5 + $0x1], 1 }

</bundles_post_ra>
